<compile_context>
chip_gen: v7x
topology: tpu7x:2x2x1
jax: 0.10.0
libtpu: 0.0.40
codegen_flags: <defaults>
</compile_context>

<pallas_src>
import jax
import jax.numpy as jnp
from jax.experimental import pallas as pl
from jax.experimental.pallas import tpu as pltpu


# ---------------------------------------------------------------------------
# Pallas kernels
# ---------------------------------------------------------------------------
def _conv_mm_relu_kernel(w_ref, p_ref, b_ref, o_ref):
    # out(O, M) = relu(W(O, K) @ P(K, M) + b(O, 1)); lane-dense M output.
    w = w_ref[...].astype(jnp.bfloat16)
    p = p_ref[...].astype(jnp.bfloat16)
    acc = jnp.dot(w, p, preferred_element_type=jnp.float32)
    acc = acc + b_ref[...]
    o_ref[...] = jnp.maximum(acc, 0.0).astype(o_ref.dtype)


def conv_mm_relu(w2d, patches_t, b):
    """relu(W @ P + b). W:(O,K), P:(K,M), b:(O,) -> (O,M) float32."""
    O, K = w2d.shape
    _, M = patches_t.shape
    return pl.pallas_call(
        _conv_mm_relu_kernel,
        out_shape=jax.ShapeDtypeStruct((O, M), jnp.float32),
        grid=(1,),
        in_specs=[
            pl.BlockSpec((O, K), lambda i: (0, 0)),
            pl.BlockSpec((K, M), lambda i: (0, 0)),
            pl.BlockSpec((O, 1), lambda i: (0, 0)),
        ],
        out_specs=pl.BlockSpec((O, M), lambda i: (0, 0)),
        compiler_params=pltpu.CompilerParams(
            dimension_semantics=("arbitrary",)),
    )(w2d, patches_t, b.reshape(O, 1))


def _fc_head_kernel(x_ref, w1_ref, b1_ref, w2_ref, b2_ref, w3_ref, b3_ref,
                    o_ref):
    # Fused fc1 -> relu -> fc2 -> relu -> fc -> log_softmax, all in VMEM.
    def mm(a, w_r, b_r):
        return jnp.dot(a.astype(jnp.bfloat16), w_r[...].astype(jnp.bfloat16),
                       preferred_element_type=jnp.float32) + b_r[...]

    h = jnp.maximum(mm(x_ref[...], w1_ref, b1_ref), 0.0)
    h = jnp.maximum(mm(h, w2_ref, b2_ref), 0.0)
    z = mm(h, w3_ref, b3_ref)
    m = jnp.max(z, axis=-1, keepdims=True)
    lse = m + jnp.log(jnp.sum(jnp.exp(z - m), axis=-1, keepdims=True))
    o_ref[...] = (z - lse).astype(o_ref.dtype)


def fc_head(x, w1, b1, w2, b2, w3, b3):
    """log_softmax(relu(relu(x@w1+b1)@w2+b2)@w3+b3) in one kernel."""
    B, K = x.shape
    N1, N2, N3 = w1.shape[1], w2.shape[1], w3.shape[1]
    return pl.pallas_call(
        _fc_head_kernel,
        out_shape=jax.ShapeDtypeStruct((B, N3), jnp.float32),
        grid=(1,),
        in_specs=[
            pl.BlockSpec((B, K), lambda i: (0, 0)),
            pl.BlockSpec((K, N1), lambda i: (0, 0)),
            pl.BlockSpec((1, N1), lambda i: (0, 0)),
            pl.BlockSpec((N1, N2), lambda i: (0, 0)),
            pl.BlockSpec((1, N2), lambda i: (0, 0)),
            pl.BlockSpec((N2, N3), lambda i: (0, 0)),
            pl.BlockSpec((1, N3), lambda i: (0, 0)),
        ],
        out_specs=pl.BlockSpec((B, N3), lambda i: (0, 0)),
        compiler_params=pltpu.CompilerParams(
            dimension_semantics=("arbitrary",)),
    )(x, w1, b1.reshape(1, N1), w2, b2.reshape(1, N2), w3, b3.reshape(1, N3))


# ---------------------------------------------------------------------------
# Glue (channel-major im2col, tiny 2x2 maxpool)
# ---------------------------------------------------------------------------
def im2col_t(x_cbhw, kh, kw):
    """x: (C, B, H, W) -> transposed patches (C*kh*kw, B*Ho*Wo).

    Row order is (c, i, j), matching w.reshape(O, C*kh*kw).
    Column order is (b, i, j), so out.reshape(O, B, Ho, Wo) is channel-major.
    """
    C, B, H, W = x_cbhw.shape
    Ho, Wo = H - kh + 1, W - kw + 1
    rows = []
    for c in range(C):
        for i in range(kh):
            for j in range(kw):
                rows.append(x_cbhw[c, :, i:i + Ho, j:j + Wo])
    pt = jnp.stack(rows, axis=0)  # (C*kh*kw, B, Ho, Wo)
    return pt.reshape(C * kh * kw, B * Ho * Wo), (B, Ho, Wo)


def conv2d_relu_cm(x_cbhw, w, b, *, pad):
    """Conv2d(stride=1, padding=pad) + ReLU, channel-major in/out (C,B,H,W)."""
    O, C, kh, kw = w.shape
    if pad:
        x_cbhw = jnp.pad(x_cbhw, ((0, 0), (0, 0), (pad, pad), (pad, pad)))
    pt, (B, Ho, Wo) = im2col_t(x_cbhw, kh, kw)
    y = conv_mm_relu(w.reshape(O, C * kh * kw), pt, b)  # (O, B*Ho*Wo)
    return y.reshape(O, B, Ho, Wo)


def max_pool2d_2x2_cm(x):
    # 2x2 / stride-2 max pool on (C, B, H, W). Tiny; kept as JAX glue.
    C, B, H, W = x.shape
    return jnp.max(x.reshape(C, B, H // 2, 2, W // 2, 2), axis=(3, 5))


# ---------------------------------------------------------------------------
# Parameters (deterministic, PyTorch-default-style uniform init).
# FC weights stored pre-transposed as (in_features, out_features).
# ---------------------------------------------------------------------------
def init_params(key):
    def linear_init(k, in_f, out_f):
        k1, k2 = jax.random.split(k)
        bound = 1.0 / float(in_f) ** 0.5
        w = jax.random.uniform(k1, (in_f, out_f), jnp.float32, -bound, bound)
        b = jax.random.uniform(k2, (out_f,), jnp.float32, -bound, bound)
        return w, b

    def conv_init(k, out_c, in_c, ksz):
        k1, k2 = jax.random.split(k)
        bound = 1.0 / float(in_c * ksz * ksz) ** 0.5
        w = jax.random.uniform(k1, (out_c, in_c, ksz, ksz), jnp.float32,
                               -bound, bound)
        b = jax.random.uniform(k2, (out_c,), jnp.float32, -bound, bound)
        return w, b

    keys = jax.random.split(key, 5)
    return {
        "conv1": conv_init(keys[0], 6, 1, 5),
        "conv2": conv_init(keys[1], 16, 6, 5),
        "fc1": linear_init(keys[2], 16 * 5 * 5, 120),
        "fc2": linear_init(keys[3], 120, 84),
        "fc": linear_init(keys[4], 84, 10),
    }


# ---------------------------------------------------------------------------
# Forward pass (matches torch Net.forward; expects 28x28 input so the flatten
# hits 16*5*5 = 400 features, as the module requires).
# ---------------------------------------------------------------------------
def net_forward(params, x):
    # x: (B, 1, 28, 28) float32, NCHW
    w1, b1 = params["conv1"]
    w2, b2 = params["conv2"]

    xc = jnp.transpose(x, (1, 0, 2, 3))          # (1, B, 28, 28) channel-major
    y = conv2d_relu_cm(xc, w1, b1, pad=2)        # (6, B, 28, 28)
    y = max_pool2d_2x2_cm(y)                     # (6, B, 14, 14)
    y = conv2d_relu_cm(y, w2, b2, pad=0)         # (16, B, 10, 10)
    y = max_pool2d_2x2_cm(y)                     # (16, B, 5, 5)

    B = y.shape[1]
    # back to per-batch (c, h, w) feature order == torch .view on NCHW
    xf = jnp.transpose(y, (1, 0, 2, 3)).reshape(B, 16 * 5 * 5)

    wf1, bf1 = params["fc1"]
    wf2, bf2 = params["fc2"]
    wf, bf = params["fc"]
    return fc_head(xf, wf1, bf1, wf2, bf2, wf, bf)   # (B, 10) log-probs


if __name__ == "__main__":
    key = jax.random.PRNGKey(0)
    pkey, xkey = jax.random.split(key)
    params = init_params(pkey)
    x = jax.random.normal(xkey, (2, 1, 28, 28), jnp.float32)

    out = jax.jit(net_forward)(params, x)
    out = jax.block_until_ready(out)

    assert out.shape == (2, 10), out.shape
    # log_softmax rows must exponentiate-sum to 1
    assert bool(jnp.allclose(jnp.exp(out).sum(axis=1), 1.0, atol=1e-4))
    print("KERNEL_OK")
</pallas_src>

<mosaic_0001>
module attributes {stable_mosaic.version = 11 : i64} {
  func.func @_conv_mm_relu_kernel(%arg0: i32, %arg1: memref<6x25xf32, #tpu.memory_space<vmem>>, %arg2: memref<25x1568xf32, #tpu.memory_space<vmem>>, %arg3: memref<6x1xf32, #tpu.memory_space<vmem>>, %arg4: memref<6x1568xf32, #tpu.memory_space<vmem>>) attributes {dimension_semantics = [#tpu.dimension_semantics<arbitrary>], iteration_bounds = array<i64: 1>, scalar_prefetch = 0 : i64, scratch_operands = 0 : i64, tpu.core_type = #tpu.core_type<tc>, window_params = [{pipeline_mode = #tpu.pipeline_mode<synchronous>, transform_indices = @transform_0, window_bounds = array<i64: 6, 25>}, {pipeline_mode = #tpu.pipeline_mode<synchronous>, transform_indices = @transform_1, window_bounds = array<i64: 25, 1568>}, {pipeline_mode = #tpu.pipeline_mode<synchronous>, transform_indices = @transform_2, window_bounds = array<i64: 6, 1>}, {pipeline_mode = #tpu.pipeline_mode<synchronous>, transform_indices = @transform_3, window_bounds = array<i64: 6, 1568>}]} {
    %c0 = arith.constant 0 : index
    %c0_0 = arith.constant 0 : index
    %0 = vector.load %arg1[%c0, %c0_0] : memref<6x25xf32, #tpu.memory_space<vmem>>, vector<6x25xf32>
    %1 = arith.truncf %0 : vector<6x25xf32> to vector<6x25xbf16>
    %c0_1 = arith.constant 0 : index
    %c0_2 = arith.constant 0 : index
    %2 = vector.load %arg2[%c0_1, %c0_2] : memref<25x1568xf32, #tpu.memory_space<vmem>>, vector<25x1568xf32>
    %3 = arith.truncf %2 : vector<25x1568xf32> to vector<25x1568xbf16>
    %cst = arith.constant dense<0.000000e+00> : vector<6x1568xf32>
    %4 = tpu.matmul %1, %3, %cst {dimension_numbers = #tpu.dot_dimension_numbers<[1], [0], [0], [1], [0, 0, 1, 1], [], []>} : vector<6x25xbf16>, vector<25x1568xbf16>, vector<6x1568xf32> -> vector<6x1568xf32>
    %c0_3 = arith.constant 0 : index
    %c0_4 = arith.constant 0 : index
    %5 = vector.load %arg3[%c0_3, %c0_4] : memref<6x1xf32, #tpu.memory_space<vmem>>, vector<6x1xf32>
    %6 = vector.broadcast %5 : vector<6x1xf32> to vector<6x1568xf32>
    %7 = arith.addf %4, %6 : vector<6x1568xf32>
    %cst_5 = arith.constant 0.000000e+00 : f32
    %8 = vector.broadcast %cst_5 : f32 to vector<6x1568xf32>
    %9 = arith.maximumf %7, %8 : vector<6x1568xf32>
    %c0_6 = arith.constant 0 : index
    %c0_7 = arith.constant 0 : index
    %10 = vector.load %arg4[%c0_6, %c0_7] : memref<6x1568xf32, #tpu.memory_space<vmem>>, vector<6x1568xf32>
    tpu.vector_store %arg4[%c0_6, %c0_7], %9 {strides = array<i32>} : memref<6x1568xf32, #tpu.memory_space<vmem>>, vector<6x1568xf32>,
    return
  }
  func.func @transform_0(%arg0: i32) -> (i32, i32) {
    %c0_i32 = arith.constant 0 : i32
    %c0_i32_0 = arith.constant 0 : i32
    %c0_i32_1 = arith.constant 0 : i32
    return %c0_i32, %c0_i32_0 : i32, i32
  }
  func.func @transform_1(%arg0: i32) -> (i32, i32) {
    %c0_i32 = arith.constant 0 : i32
    %c0_i32_0 = arith.constant 0 : i32
    %c0_i32_1 = arith.constant 0 : i32
    return %c0_i32, %c0_i32_0 : i32, i32
  }
  func.func @transform_2(%arg0: i32) -> (i32, i32) {
    %c0_i32 = arith.constant 0 : i32
    %c0_i32_0 = arith.constant 0 : i32
    %c0_i32_1 = arith.constant 0 : i32
    return %c0_i32, %c0_i32_0 : i32, i32
  }
  func.func @transform_3(%arg0: i32) -> (i32, i32) {
    %c0_i32 = arith.constant 0 : i32
    %c0_i32_0 = arith.constant 0 : i32
    %c0_i32_1 = arith.constant 0 : i32
    return %c0_i32, %c0_i32_0 : i32, i32
  }
}

module attributes {stable_mosaic.version = 11 : i64} {
  func.func @_conv_mm_relu_kernel(%arg0: i32, %arg1: memref<16x150xf32, #tpu.memory_space<vmem>>, %arg2: memref<150x200xf32, #tpu.memory_space<vmem>>, %arg3: memref<16x1xf32, #tpu.memory_space<vmem>>, %arg4: memref<16x200xf32, #tpu.memory_space<vmem>>) attributes {dimension_semantics = [#tpu.dimension_semantics<arbitrary>], iteration_bounds = array<i64: 1>, scalar_prefetch = 0 : i64, scratch_operands = 0 : i64, tpu.core_type = #tpu.core_type<tc>, window_params = [{pipeline_mode = #tpu.pipeline_mode<synchronous>, transform_indices = @transform_0, window_bounds = array<i64: 16, 150>}, {pipeline_mode = #tpu.pipeline_mode<synchronous>, transform_indices = @transform_1, window_bounds = array<i64: 150, 200>}, {pipeline_mode = #tpu.pipeline_mode<synchronous>, transform_indices = @transform_2, window_bounds = array<i64: 16, 1>}, {pipeline_mode = #tpu.pipeline_mode<synchronous>, transform_indices = @transform_3, window_bounds = array<i64: 16, 200>}]} {
    %c0 = arith.constant 0 : index
    %c0_0 = arith.constant 0 : index
    %0 = vector.load %arg1[%c0, %c0_0] : memref<16x150xf32, #tpu.memory_space<vmem>>, vector<16x150xf32>
    %1 = arith.truncf %0 : vector<16x150xf32> to vector<16x150xbf16>
    %c0_1 = arith.constant 0 : index
    %c0_2 = arith.constant 0 : index
    %2 = vector.load %arg2[%c0_1, %c0_2] : memref<150x200xf32, #tpu.memory_space<vmem>>, vector<150x200xf32>
    %3 = arith.truncf %2 : vector<150x200xf32> to vector<150x200xbf16>
    %cst = arith.constant dense<0.000000e+00> : vector<16x200xf32>
    %4 = tpu.matmul %1, %3, %cst {dimension_numbers = #tpu.dot_dimension_numbers<[1], [0], [0], [1], [0, 0, 1, 1], [], []>} : vector<16x150xbf16>, vector<150x200xbf16>, vector<16x200xf32> -> vector<16x200xf32>
    %c0_3 = arith.constant 0 : index
    %c0_4 = arith.constant 0 : index
    %5 = vector.load %arg3[%c0_3, %c0_4] : memref<16x1xf32, #tpu.memory_space<vmem>>, vector<16x1xf32>
    %6 = vector.broadcast %5 : vector<16x1xf32> to vector<16x200xf32>
    %7 = arith.addf %4, %6 : vector<16x200xf32>
    %cst_5 = arith.constant 0.000000e+00 : f32
    %8 = vector.broadcast %cst_5 : f32 to vector<16x200xf32>
    %9 = arith.maximumf %7, %8 : vector<16x200xf32>
    %c0_6 = arith.constant 0 : index
    %c0_7 = arith.constant 0 : index
    %10 = vector.load %arg4[%c0_6, %c0_7] : memref<16x200xf32, #tpu.memory_space<vmem>>, vector<16x200xf32>
    tpu.vector_store %arg4[%c0_6, %c0_7], %9 {strides = array<i32>} : memref<16x200xf32, #tpu.memory_space<vmem>>, vector<16x200xf32>,
    return
  }
  func.func @transform_0(%arg0: i32) -> (i32, i32) {
    %c0_i32 = arith.constant 0 : i32
    %c0_i32_0 = arith.constant 0 : i32
    %c0_i32_1 = arith.constant 0 : i32
    return %c0_i32, %c0_i32_0 : i32, i32
  }
  func.func @transform_1(%arg0: i32) -> (i32, i32) {
    %c0_i32 = arith.constant 0 : i32
    %c0_i32_0 = arith.constant 0 : i32
    %c0_i32_1 = arith.constant 0 : i32
    return %c0_i32, %c0_i32_0 : i32, i32
  }
  func.func @transform_2(%arg0: i32) -> (i32, i32) {
    %c0_i32 = arith.constant 0 : i32
    %c0_i32_0 = arith.constant 0 : i32
    %c0_i32_1 = arith.constant 0 : i32
    return %c0_i32, %c0_i32_0 : i32, i32
  }
  func.func @transform_3(%arg0: i32) -> (i32, i32) {
    %c0_i32 = arith.constant 0 : i32
    %c0_i32_0 = arith.constant 0 : i32
    %c0_i32_1 = arith.constant 0 : i32
    return %c0_i32, %c0_i32_0 : i32, i32
  }
}

module attributes {stable_mosaic.version = 11 : i64} {
  func.func @_fc_head_kernel(%arg0: i32, %arg1: memref<2x400xf32, #tpu.memory_space<vmem>>, %arg2: memref<400x120xf32, #tpu.memory_space<vmem>>, %arg3: memref<1x120xf32, #tpu.memory_space<vmem>>, %arg4: memref<120x84xf32, #tpu.memory_space<vmem>>, %arg5: memref<1x84xf32, #tpu.memory_space<vmem>>, %arg6: memref<84x10xf32, #tpu.memory_space<vmem>>, %arg7: memref<1x10xf32, #tpu.memory_space<vmem>>, %arg8: memref<2x10xf32, #tpu.memory_space<vmem>>) attributes {dimension_semantics = [#tpu.dimension_semantics<arbitrary>], iteration_bounds = array<i64: 1>, scalar_prefetch = 0 : i64, scratch_operands = 0 : i64, tpu.core_type = #tpu.core_type<tc>, window_params = [{pipeline_mode = #tpu.pipeline_mode<synchronous>, transform_indices = @transform_0, window_bounds = array<i64: 2, 400>}, {pipeline_mode = #tpu.pipeline_mode<synchronous>, transform_indices = @transform_1, window_bounds = array<i64: 400, 120>}, {pipeline_mode = #tpu.pipeline_mode<synchronous>, transform_indices = @transform_2, window_bounds = array<i64: 1, 120>}, {pipeline_mode = #tpu.pipeline_mode<synchronous>, transform_indices = @transform_3, window_bounds = array<i64: 120, 84>}, {pipeline_mode = #tpu.pipeline_mode<synchronous>, transform_indices = @transform_4, window_bounds = array<i64: 1, 84>}, {pipeline_mode = #tpu.pipeline_mode<synchronous>, transform_indices = @transform_5, window_bounds = array<i64: 84, 10>}, {pipeline_mode = #tpu.pipeline_mode<synchronous>, transform_indices = @transform_6, window_bounds = array<i64: 1, 10>}, {pipeline_mode = #tpu.pipeline_mode<synchronous>, transform_indices = @transform_7, window_bounds = array<i64: 2, 10>}]} {
    %c0 = arith.constant 0 : index
    %c0_0 = arith.constant 0 : index
    %0 = vector.load %arg1[%c0, %c0_0] : memref<2x400xf32, #tpu.memory_space<vmem>>, vector<2x400xf32>
    %1 = arith.truncf %0 : vector<2x400xf32> to vector<2x400xbf16>
    %c0_1 = arith.constant 0 : index
    %c0_2 = arith.constant 0 : index
    %2 = vector.load %arg2[%c0_1, %c0_2] : memref<400x120xf32, #tpu.memory_space<vmem>>, vector<400x120xf32>
    %3 = arith.truncf %2 : vector<400x120xf32> to vector<400x120xbf16>
    %cst = arith.constant dense<0.000000e+00> : vector<2x120xf32>
    %4 = tpu.matmul %1, %3, %cst {dimension_numbers = #tpu.dot_dimension_numbers<[1], [0], [0], [1], [0, 0, 1, 1], [], []>} : vector<2x400xbf16>, vector<400x120xbf16>, vector<2x120xf32> -> vector<2x120xf32>
    %c0_3 = arith.constant 0 : index
    %c0_4 = arith.constant 0 : index
    %5 = vector.load %arg3[%c0_3, %c0_4] : memref<1x120xf32, #tpu.memory_space<vmem>>, vector<1x120xf32>
    %6 = vector.broadcast %5 : vector<1x120xf32> to vector<2x120xf32>
    %7 = arith.addf %4, %6 : vector<2x120xf32>
    %cst_5 = arith.constant 0.000000e+00 : f32
    %8 = vector.broadcast %cst_5 : f32 to vector<2x120xf32>
    %9 = arith.maximumf %7, %8 : vector<2x120xf32>
    %10 = arith.truncf %9 : vector<2x120xf32> to vector<2x120xbf16>
    %c0_6 = arith.constant 0 : index
    %c0_7 = arith.constant 0 : index
    %11 = vector.load %arg4[%c0_6, %c0_7] : memref<120x84xf32, #tpu.memory_space<vmem>>, vector<120x84xf32>
    %12 = arith.truncf %11 : vector<120x84xf32> to vector<120x84xbf16>
    %cst_8 = arith.constant dense<0.000000e+00> : vector<2x84xf32>
    %13 = tpu.matmul %10, %12, %cst_8 {dimension_numbers = #tpu.dot_dimension_numbers<[1], [0], [0], [1], [0, 0, 1, 1], [], []>} : vector<2x120xbf16>, vector<120x84xbf16>, vector<2x84xf32> -> vector<2x84xf32>
    %c0_9 = arith.constant 0 : index
    %c0_10 = arith.constant 0 : index
    %14 = vector.load %arg5[%c0_9, %c0_10] : memref<1x84xf32, #tpu.memory_space<vmem>>, vector<1x84xf32>
    %15 = vector.broadcast %14 : vector<1x84xf32> to vector<2x84xf32>
    %16 = arith.addf %13, %15 : vector<2x84xf32>
    %cst_11 = arith.constant 0.000000e+00 : f32
    %17 = vector.broadcast %cst_11 : f32 to vector<2x84xf32>
    %18 = arith.maximumf %16, %17 : vector<2x84xf32>
    %19 = arith.truncf %18 : vector<2x84xf32> to vector<2x84xbf16>
    %c0_12 = arith.constant 0 : index
    %c0_13 = arith.constant 0 : index
    %20 = vector.load %arg6[%c0_12, %c0_13] : memref<84x10xf32, #tpu.memory_space<vmem>>, vector<84x10xf32>
    %21 = arith.truncf %20 : vector<84x10xf32> to vector<84x10xbf16>
    %cst_14 = arith.constant dense<0.000000e+00> : vector<2x10xf32>
    %22 = tpu.matmul %19, %21, %cst_14 {dimension_numbers = #tpu.dot_dimension_numbers<[1], [0], [0], [1], [0, 0, 1, 1], [], []>} : vector<2x84xbf16>, vector<84x10xbf16>, vector<2x10xf32> -> vector<2x10xf32>
    %c0_15 = arith.constant 0 : index
    %c0_16 = arith.constant 0 : index
    %23 = vector.load %arg7[%c0_15, %c0_16] : memref<1x10xf32, #tpu.memory_space<vmem>>, vector<1x10xf32>
    %24 = vector.broadcast %23 : vector<1x10xf32> to vector<2x10xf32>
    %25 = arith.addf %22, %24 : vector<2x10xf32>
    %cst_17 = arith.constant dense<0xFF800000> : vector<2xf32>
    %26 = vector.multi_reduction <maximumf>, %25, %cst_17 [1] : vector<2x10xf32> to vector<2xf32>
    %27 = vector.shape_cast %26 : vector<2xf32> to vector<2x1xf32>
    %28 = vector.broadcast %27 : vector<2x1xf32> to vector<2x10xf32>
    %29 = arith.subf %25, %28 : vector<2x10xf32>
    %30 = math.exp %29 : vector<2x10xf32>
    %cst_18 = arith.constant dense<0.000000e+00> : vector<2xf32>
    %31 = vector.multi_reduction <add>, %30, %cst_18 [1] : vector<2x10xf32> to vector<2xf32>
    %32 = vector.shape_cast %31 : vector<2xf32> to vector<2x1xf32>
    %33 = math.log %32 : vector<2x1xf32>
    %34 = arith.addf %27, %33 : vector<2x1xf32>
    %35 = vector.broadcast %34 : vector<2x1xf32> to vector<2x10xf32>
    %36 = arith.subf %25, %35 : vector<2x10xf32>
    %c0_19 = arith.constant 0 : index
    %c0_20 = arith.constant 0 : index
    %37 = vector.load %arg8[%c0_19, %c0_20] : memref<2x10xf32, #tpu.memory_space<vmem>>, vector<2x10xf32>
    tpu.vector_store %arg8[%c0_19, %c0_20], %36 {strides = array<i32>} : memref<2x10xf32, #tpu.memory_space<vmem>>, vector<2x10xf32>,
    return
  }
  func.func @transform_0(%arg0: i32) -> (i32, i32) {
    %c0_i32 = arith.constant 0 : i32
    %c0_i32_0 = arith.constant 0 : i32
    %c0_i32_1 = arith.constant 0 : i32
    return %c0_i32, %c0_i32_0 : i32, i32
  }
  func.func @transform_1(%arg0: i32) -> (i32, i32) {
    %c0_i32 = arith.constant 0 : i32
    %c0_i32_0 = arith.constant 0 : i32
    %c0_i32_1 = arith.constant 0 : i32
    return %c0_i32, %c0_i32_0 : i32, i32
  }
  func.func @transform_2(%arg0: i32) -> (i32, i32) {
    %c0_i32 = arith.constant 0 : i32
    %c0_i32_0 = arith.constant 0 : i32
    %c0_i32_1 = arith.constant 0 : i32
    return %c0_i32, %c0_i32_0 : i32, i32
  }
  func.func @transform_3(%arg0: i32) -> (i32, i32) {
    %c0_i32 = arith.constant 0 : i32
    %c0_i32_0 = arith.constant 0 : i32
    %c0_i32_1 = arith.constant 0 : i32
    return %c0_i32, %c0_i32_0 : i32, i32
  }
  func.func @transform_4(%arg0: i32) -> (i32, i32) {
    %c0_i32 = arith.constant 0 : i32
    %c0_i32_0 = arith.constant 0 : i32
    %c0_i32_1 = arith.constant 0 : i32
    return %c0_i32, %c0_i32_0 : i32, i32
  }
  func.func @transform_5(%arg0: i32) -> (i32, i32) {
    %c0_i32 = arith.constant 0 : i32
    %c0_i32_0 = arith.constant 0 : i32
    %c0_i32_1 = arith.constant 0 : i32
    return %c0_i32, %c0_i32_0 : i32, i32
  }
  func.func @transform_6(%arg0: i32) -> (i32, i32) {
    %c0_i32 = arith.constant 0 : i32
    %c0_i32_0 = arith.constant 0 : i32
    %c0_i32_1 = arith.constant 0 : i32
    return %c0_i32, %c0_i32_0 : i32, i32
  }
  func.func @transform_7(%arg0: i32) -> (i32, i32) {
    %c0_i32 = arith.constant 0 : i32
    %c0_i32_0 = arith.constant 0 : i32
    %c0_i32_1 = arith.constant 0 : i32
    return %c0_i32, %c0_i32_0 : i32, i32
  }
}

</mosaic_0001>

<bundles_post_ra>
// kernel: net_forward.3
= control target key start
LH: loop header
LB: loop body
LE: loop exit
PB: predicated region body
PF: predicated region fallthrough
CT: control target
= control target key end

     0   :  { %vm105_vm0 = vcmask 1043456   ;;  %vm106_vm1 = vcmask 1044480   ;;  %v488_v3 = vmov 65535   ;;  %v489_v5 = vmov 0   ;;  %s766_s1 = inlined_call_operand.vmem [shape: f32[25,1568], index: 1, kind: input, shape index: {}]   ;;  %s767_s0 = inlined_call_operand.vmem [shape: f32[6,25], index: 0, kind: input, shape index: {}]   ;;  %s768_s2 = inlined_call_operand.vmem [shape: f32[6,1], index: 2, kind: input, shape index: {}]   ;;  %s769_s3 = inlined_call_operand.vmem [shape: f32[6,1568], index: 3, kind: output, shape index: {}]  }
   0x1   :  { %v18_v0 = vld [vmem:[%s766_s1 + $0x8] sm:$0xff]  ;;  %v31_v1 = vld [vmem:[%s766_s1 + $0x70] sm:$0xff]  ;;  %v17_v2 = vld [vmem:[%s766_s1] sm:$0xff]  ;;  %v107_v4 = vsel %vm105_vm0, 4294967295, %v488_v3  ;;  %180 = vmatprep.mubr.bf16.mxu0 %v489_v5  ;;  %221 = vmatprep.mubr.bf16.mxu1 %v489_v5  ;;  %vm101_vm2 = vcmask 203776   ;;  %vm491_vm3 = vmmov 0  }
   0x2   :  { %v70_v6 = vpack.c.bf16 %v31_v1, %v18_v0  ;;  %v30_v7 = vld [vmem:[%s766_s1 + $0x68] sm:$0xff]  ;;  %v44_v8 = vld [vmem:[%s766_s1 + $0xd8] sm:$0xff]  ;;  %v57_v9 = vld [vmem:[%s766_s1 + $0x140] sm:$0x1]  ;;  %v532_v10 = vsel %vm106_vm1, %v107_v4, 0  ;;  %487 = vset.pattern.permute.xlu0 %v489_v5  ;;  %vm459_vm4 = vcmask 259072  }
   0x3   :  { %v69_v11 = vpack.c.bf16 %v30_v7, %v17_v2  ;;  %v83_v12 = vpack.c.bf16 %v57_v9, %v44_v8  ;;  %v43_v13 = vld [vmem:[%s766_s1 + $0xd0] sm:$0xff]  ;;  %v56_v14 = vld [vmem:[%s766_s1 + $0x138] sm:$0x1]  ;;  %v33_v17 = vld [vmem:[%s766_s1 + $0x80] sm:$0xff] }
   0x4   :  { %v20_v15 = vld [vmem:[%s766_s1 + $0x18] sm:$0xff]  ;;  %148 = vmatprep.subr.bf16.mxu0 %v70_v6  ;;  %v82_v16 = vpack.c.bf16 %v56_v14, %v43_v13  ;;  %v19_v18 = vld [vmem:[%s766_s1 + $0x10] sm:$0xff]  ;;  %v15_v23 = vld [vmem:[%s767_s0] sm:$0x3f] }
   0x5   :  { %v32_v19 = vld [vmem:[%s766_s1 + $0x78] sm:$0xff]  ;;  %149 = vmatpush1.bf16.msra.mxu0 %v69_v11  ;;  %v113_v20 = vand.u32 %v532_v10, %v83_v12  ;;  %v72_v21 = vpack.c.bf16 %v33_v17, %v20_v15  ;;  %v22_v24 = vld [vmem:[%s766_s1 + $0x28] sm:$0xff]  ;;  %v35_v25 = vld [vmem:[%s766_s1 + $0x90] sm:$0xff]  ;;  %v582_v35 = vpack.c.bf16 %v15_v23, %v15_v23 }
   0x6   :  { %v71_v22 = vpack.c.bf16 %v32_v19, %v19_v18  ;;  %v110_v26 = vand.u32 %v532_v10, %v82_v16  ;;  %v74_v27 = vpack.c.bf16 %v35_v25, %v22_v24  ;;  %v46_v28 = vld [vmem:[%s766_s1 + $0xe8] sm:$0xff]  ;;  %v59_v29 = vld [vmem:[%s766_s1 + $0x150] sm:$0x1]  ;;  %v21_v30 = vld [vmem:[%s766_s1 + $0x20] sm:$0xff] }
   0x7   :  { %150 = vmatprep.subr.bf16.mxu0 %v113_v20  ;;  %189 = vmatprep.subr.bf16.mxu1 %v72_v21  ;;  %v85_v31 = vpack.c.bf16 %v59_v29, %v46_v28  ;;  %v34_v32 = vld [vmem:[%s766_s1 + $0x88] sm:$0xff]  ;;  %v45_v33 = vld [vmem:[%s766_s1 + $0xe0] sm:$0xff]  ;;  %v48_v37 = vld [vmem:[%s766_s1 + $0xf8] sm:$0xff] }
   0x8   :  { %v58_v34 = vld [vmem:[%s766_s1 + $0x148] sm:$0x1]  ;;  %190 = vmatpush1.bf16.msra.mxu1 %v71_v22  ;;  %v61_v38 = vld [vmem:[%s766_s1 + $0x160] sm:$0x1]  ;;  %v47_v39 = vld [vmem:[%s766_s1 + $0xf0] sm:$0xff]  ;;  %v73_v41 = vpack.c.bf16 %v34_v32, %v21_v30 }
   0x9   :  { %v84_v36 = vpack.c.bf16 %v58_v34, %v45_v33  ;;  %151 = vmatpush1.bf16.msra.mxu0 %v110_v26  ;;  %v119_v40 = vand.u32 %v532_v10, %v85_v31  ;;  %v87_v42 = vpack.c.bf16 %v61_v38, %v48_v37  ;;  %v60_v43 = vld [vmem:[%s766_s1 + $0x158] sm:$0x1]  ;;  %v37_v45 = vld [vmem:[%s766_s1 + $0xa0] sm:$0xff]  ;;  %v23_v49 = vld [vmem:[%s766_s1 + $0x30] sm:$0xff] }
   0xa   :  { %v24_v44 = vld [vmem:[%s766_s1 + $0x38] sm:$0xff]  ;;  %230 = vmatprep.subr.bf16.mxu0 %v74_v27  ;;  %v86_v47 = vpack.c.bf16 %v60_v43, %v47_v39  ;;  %v26_v51 = vld [vmem:[%s766_s1 + $0x48] sm:$0xff]  ;;  %v39_v53 = vld [vmem:[%s766_s1 + $0xb0] sm:$0xff] }
   0xb   :  { %v116_v46 = vand.u32 %v532_v10, %v84_v36  ;;  %v76_v48 = vpack.c.bf16 %v37_v45, %v24_v44  ;;  %v36_v50 = vld [vmem:[%s766_s1 + $0x98] sm:$0xff]  ;;  %191 = vmatprep.subr.bf16.mxu1 %v119_v40  ;;  %v125_v52 = vand.u32 %v532_v10, %v87_v42  ;;  %v50_v54 = vld [vmem:[%s766_s1 + $0x108] sm:$0xff]  ;;  %v63_v55 = vld [vmem:[%s766_s1 + $0x170] sm:$0x1]  ;;  %v78_v62 = vpack.c.bf16 %v39_v53, %v26_v51 }
   0xc   :  { %465 = vmatmul.mubr.msk.bf16.vlgmr.msra.gmra.mrb[0].mxu0 %vm101_vm2, %v582_v35  ;;  %v75_v56 = vpack.c.bf16 %v36_v50, %v23_v49  ;;  %v89_v57 = vpack.c.bf16 %v63_v55, %v50_v54  ;;  %v25_v58 = vld [vmem:[%s766_s1 + $0x40] sm:$0xff]  ;;  %v38_v59 = vld [vmem:[%s766_s1 + $0xa8] sm:$0xff]  ;;  %v122_v61 = vand.u32 %v532_v10, %v86_v47  ;;  %v52_v0 = vld [vmem:[%s766_s1 + $0x118] sm:$0xff]  ;;  %v490_v36 = vmov 0.0  }
   0xd   :  { %192 = vmatpush1.bf16.msra.mxu1 %v116_v46  ;;  %v49_v60 = vld [vmem:[%s766_s1 + $0x100] sm:$0xff]  ;;  %231 = vmatpush1.bf16.msra.mxu0 %v73_v41  ;;  %v62_v63 = vld [vmem:[%s766_s1 + $0x168] sm:$0x1]  ;;  %v51_v6 = vld [vmem:[%s766_s1 + $0x110] sm:$0xff]  ;;  %v77_v11 = vpack.c.bf16 %v38_v59, %v25_v58 }
   0xe   :  { %271 = vmatprep.subr.bf16.mxu1 %v76_v48  ;;  %v65_v1 = vld [vmem:[%s766_s1 + $0x180] sm:$0x1]  ;;  %232 = vmatprep.subr.bf16.mxu0 %v125_v52  ;;  %v131_v2 = vand.u32 %v532_v10, %v89_v57  ;;  %v88_v3 = vpack.c.bf16 %v62_v63, %v49_v60  ;;  %v64_v7 = vld [vmem:[%s766_s1 + $0x178] sm:$0x1]  ;;  %v27_v13 = vld [vmem:[%s766_s1 + $0x50] sm:$0xff] }
   0xf   :  { %262 = vmatprep.mubr.bf16.mxu0 %v489_v5  ;;  %v91_v4 = vpack.c.bf16 %v65_v1, %v52_v0  ;;  %v28_v8 = vld [vmem:[%s766_s1 + $0x58] sm:$0xff]  ;;  %v41_v9 = vld [vmem:[%s766_s1 + $0xc0] sm:$0xff]  ;;  %v54_v14 = vld [vmem:[%s766_s1 + $0x128] sm:$0xff]  ;;  %v90_v16 = vpack.c.bf16 %v64_v7, %v51_v6 }
  0x10   :  { %466 = vmatmul.mubr.msk.bf16.vlgmr.msra.gmra.mrb[0].mxu1 %vm101_vm2, %v582_v35  ;;  %v128_v12 = vand.u32 %v532_v10, %v88_v3  ;;  %v67_v15 = vld [vmem:[%s766_s1 + $0x190] sm:$0x1]  ;;  %v80_v17 = vpack.c.bf16 %v41_v9, %v28_v8  ;;  %v40_v18 = vld [vmem:[%s766_s1 + $0xb8] sm:$0xff]  ;;  %v53_v20 = vld [vmem:[%s766_s1 + $0x120] sm:$0xff] }
  0x11   :  { %272 = vmatpush1.bf16.msra.mxu1 %v75_v56  ;;  %303 = vmatprep.mubr.bf16.mxu1 %v489_v5  ;;  %v93_v19 = vpack.c.bf16 %v67_v15, %v54_v14  ;;  %v66_v21 = vld [vmem:[%s766_s1 + $0x188] sm:$0x1]  ;;  %v137_v22 = vand.u32 %v532_v10, %v91_v4  ;;  %v95_v23 = vld [vmem:[%s768_s2] sm:$0x3f]  ;;  %v79_v24 = vpack.c.bf16 %v40_v18, %v27_v13  ;;  %v55_v30 = vld [vmem:[%s766_s1 + $0x130] sm:$0xff] }
  0x12   :  { %233 = vmatpush1.bf16.msra.mxu0 %v122_v61  ;;  %273 = vmatprep.subr.bf16.mxu1 %v131_v2  ;;  %v92_v25 = vpack.c.bf16 %v66_v21, %v53_v20  ;;  %v134_v26 = vand.u32 %v532_v10, %v90_v16  ;;  %v29_v28 = vld [vmem:[%s766_s1 + $0x60] sm:$0xff]  ;;  %v42_v29 = vld [vmem:[%s766_s1 + $0xc8] sm:$0xff]  ;;  %v68_v31 = vld [vmem:[%s766_s1 + $0x198] sm:$0x1] }
  0x13   :  { %312 = vmatprep.subr.bf16.mxu0 %v78_v62  ;;  %98 = vperm.xlu0 %487, %v95_v23   ;;  %v143_v27 = vand.u32 %v532_v10, %v93_v19  ;;  %v81_v33 = vpack.c.bf16 %v42_v29, %v29_v28  ;;  %v94_v34 = vpack.c.bf16 %v68_v31, %v55_v30 }
  0x14   :  { %v140_v32 = vand.u32 %v532_v10, %v92_v25 }
  0x15   :  { %467 = vmatmul.mubr.msk.bf16.vlgmr.msra.gmra.mrb[4].mxu0 %vm101_vm2, %v582_v35  ;;  %274 = vmatpush1.bf16.msra.mxu1 %v128_v12  ;;  %v146_v37 = vand.u32 %v532_v10, %v94_v34 }
  0x16   :  { %313 = vmatpush1.bf16.msra.mxu0 %v77_v11  ;;  %353 = vmatprep.subr.bf16.mxu1 %v80_v17 }
  0x17   :  { %314 = vmatprep.subr.bf16.mxu0 %v137_v22  ;;  %344 = vmatprep.mubr.bf16.mxu0 %v489_v5 }
  0x18   :  { %468 = vmatmul.mubr.msk.bf16.vlgmr.msra.gmra.mrb[4].mxu1 %vm101_vm2, %v582_v35 }
  0x19   :  { %354 = vmatpush1.bf16.msra.mxu1 %v79_v24  ;;  %385 = vmatprep.mubr.bf16.mxu1 %v489_v5 }
  0x1a   :  { %315 = vmatpush1.bf16.msra.mxu0 %v134_v26  ;;  %355 = vmatprep.subr.bf16.mxu1 %v143_v27 }
  0x1b   :  { %475 = vmatprep.subr.bf16.mxu0 %v490_v36 }
  0x1d   :  { %469 = vmatmul.mubr.msk.bf16.vlgmr.msra.gmra.mrb[8].mxu0 %vm101_vm2, %v582_v35  ;;  %356 = vmatpush1.bf16.msra.mxu1 %v140_v32 }
  0x1e   :  { %476 = vmatpush3.bf16.msra.mxu0 %v81_v33  ;;  %479 = vmatprep.mubr.msk.bf16.mxu0 %vm491_vm3, %v490_v36 }
  0x1f   :  { %477 = vmatprep.subr.bf16.mxu0 %v490_v36 }
  0x20   :  { %470 = vmatmul.mubr.msk.bf16.vlgmr.msra.gmra.mrb[8].mxu1 %vm101_vm2, %v582_v35 }
  0x22   :  { %478 = vmatpush3.bf16.msra.mxu0 %v146_v37 }
  0x25   :  { %480 = vmatmul.mubr.msk.bf16.vlgmr.msra.gmra.mrb[12].mxu0 %vm101_vm2, %v582_v35 }
  0x92   :  { %v712_v5 = vpop.permute.xlu0 %98 }
  0xdf   :  { %v182_v38 = vpop.f32.mrb[0].mxu0 }
  0xe0   :  { %v183_v39 = vadd.f32 %v182_v38, %v712_v5  ;;  %v184_v40 = vpop.f32.mrb[1].mxu0 }
  0xe1   :  { %v185_v41 = vadd.f32 %v184_v40, %v712_v5  ;;  %v186_v42 = vpop.f32.mrb[2].mxu0 }
  0xe2   :  { %v434_v10 = vmax.f32 %v183_v39, 0.0  ;;  %v187_v43 = vpop.f32.mrb[3].mxu0 }
  0xe3   :  { %v223_v44 = vpop.f32.mrb[0].mxu1  ;;  %v435_v45 = vmax.f32 %v185_v41, 0.0 }
  0xe4   :  { %v224_v46 = vadd.f32 %v223_v44, %v712_v5  ;;  %v225_v47 = vpop.f32.mrb[1].mxu1  ;;  %447 = vst [vmem:[%s769_s3] sm:$0x3f] %v434_v10 }
  0xe5   :  { %v226_v35 = vadd.f32 %v225_v47, %v712_v5  ;;  %v227_v48 = vpop.f32.mrb[2].mxu1  ;;  %448 = vst [vmem:[%s769_s3 + $0x8] sm:$0x3f] %v435_v45 }
  0xe6   :  { %v436_v49 = vmax.f32 %v224_v46, 0.0  ;;  %v228_v50 = vpop.f32.mrb[3].mxu1 }
  0xe7   :  { %v437_v51 = vmax.f32 %v226_v35, 0.0 }
  0xe8   :  { %449 = vst [vmem:[%s769_s3 + $0x10] sm:$0x3f] %v436_v49  ;;  %v264_v52 = vpop.f32.mrb[4].mxu0 }
  0xe9   :  { %450 = vst [vmem:[%s769_s3 + $0x18] sm:$0x3f] %v437_v51  ;;  %v265_v53 = vadd.f32 %v264_v52, %v712_v5  ;;  %v266_v54 = vpop.f32.mrb[5].mxu0 }
  0xea   :  { %v267_v55 = vadd.f32 %v266_v54, %v712_v5  ;;  %v268_v56 = vpop.f32.mrb[6].mxu0 }
  0xeb   :  { %v438_v57 = vmax.f32 %v265_v53, 0.0  ;;  %v269_v58 = vpop.f32.mrb[7].mxu0  ;;  %v305_v59 = vpop.f32.mrb[4].mxu1 }
  0xec   :  { %v439_v60 = vmax.f32 %v267_v55, 0.0  ;;  %v306_v61 = vadd.f32 %v305_v59, %v712_v5  ;;  %v307_v62 = vpop.f32.mrb[5].mxu1 }
  0xed   :  { %451 = vst [vmem:[%s769_s3 + $0x20] sm:$0x3f] %v438_v57  ;;  %v308_v63 = vadd.f32 %v307_v62, %v712_v5  ;;  %v309_v0 = vpop.f32.mrb[6].mxu1 }
  0xee   :  { %452 = vst [vmem:[%s769_s3 + $0x28] sm:$0x3f] %v439_v60  ;;  %v440_v1 = vmax.f32 %v306_v61, 0.0  ;;  %v310_v2 = vpop.f32.mrb[7].mxu1 }
  0xef   :  { %v441_v3 = vmax.f32 %v308_v63, 0.0 }
  0xf0   :  { %453 = vst [vmem:[%s769_s3 + $0x30] sm:$0x3f] %v440_v1  ;;  %v346_v4 = vpop.f32.mrb[8].mxu0 }
  0xf1   :  { %454 = vst [vmem:[%s769_s3 + $0x38] sm:$0x3f] %v441_v3  ;;  %v347_v6 = vadd.f32 %v346_v4, %v712_v5  ;;  %v348_v7 = vpop.f32.mrb[9].mxu0 }
  0xf2   :  { %v349_v8 = vadd.f32 %v348_v7, %v712_v5  ;;  %v350_v9 = vpop.f32.mrb[10].mxu0 }
  0xf3   :  { %v442_v11 = vmax.f32 %v347_v6, 0.0  ;;  %v351_v12 = vpop.f32.mrb[11].mxu0  ;;  %v387_v13 = vpop.f32.mrb[8].mxu1 }
  0xf4   :  { %v443_v14 = vmax.f32 %v349_v8, 0.0  ;;  %v388_v15 = vadd.f32 %v387_v13, %v712_v5  ;;  %v389_v16 = vpop.f32.mrb[9].mxu1 }
  0xf5   :  { %455 = vst [vmem:[%s769_s3 + $0x40] sm:$0x3f] %v442_v11  ;;  %v390_v17 = vadd.f32 %v389_v16, %v712_v5  ;;  %v391_v18 = vpop.f32.mrb[10].mxu1 }
  0xf6   :  { %456 = vst [vmem:[%s769_s3 + $0x48] sm:$0x3f] %v443_v14  ;;  %v444_v19 = vmax.f32 %v388_v15, 0.0  ;;  %v392_v20 = vpop.f32.mrb[11].mxu1 }
  0xf7   :  { %v445_v21 = vmax.f32 %v390_v17, 0.0 }
  0xf8   :  { %457 = vst [vmem:[%s769_s3 + $0x50] sm:$0x3f] %v444_v19  ;;  %v428_v22 = vpop.f32.mrb[12].mxu0 }
  0xf9   :  { %458 = vst [vmem:[%s769_s3 + $0x58] sm:$0x3f] %v445_v21  ;;  %v429_v23 = vadd.f32 %v428_v22, %v712_v5  ;;  %v481_v24 = vpop.f32.mrb[13].mxu0 }
  0xfa   :  { %v431_v25 = vpop.f32.mrb[14].mxu0 }
  0xfb   :  { %v446_v26 = vmax.f32 %v429_v23, 0.0  ;;  %v482_v27 = vpop.f32.mrb[15].mxu0 }
  0xfd   :  { %460 = vst.msk [vmem:[%s769_s3 + $0x60] sm:$0x3f] %vm459_vm4, %v446_v26 }

// kernel: net_forward.4
= control target key start
LH: loop header
LB: loop body
LE: loop exit
PB: predicated region body
PF: predicated region fallthrough
CT: control target
= control target key end

     0   :  { %v162_v3 = vmov 0   ;;  %vm91_vm0 = vcmask 179200   ;;  %vm95_vm1 = vcmask 1042432   ;;  %vm150_vm2 = vcmask 588800   ;;  %s327_s1 = inlined_call_operand.vmem [shape: f32[150,200], index: 1, kind: input, shape index: {}]   ;;  %s328_s0 = inlined_call_operand.vmem [shape: f32[16,150], index: 0, kind: input, shape index: {}]   ;;  %s329_s2 = inlined_call_operand.vmem [shape: f32[16,1], index: 2, kind: input, shape index: {}]   ;;  %s330_s3 = inlined_call_operand.vmem [shape: f32[16,200], index: 3, kind: output, shape index: {}]  }
   0x1   :  { %v22_v0 = vld [vmem:[%s327_s1 + $0x8] sm:$0xff]  ;;  %v24_v1 = vld [vmem:[%s327_s1 + $0x18] sm:$0xff]  ;;  %v21_v2 = vld [vmem:[%s327_s1] sm:$0xff]  ;;  %161 = vset.pattern.permute.xlu0 %v162_v3 }
   0x2   :  { %v60_v4 = vpack.c.bf16 %v24_v1, %v22_v0  ;;  %v23_v5 = vld [vmem:[%s327_s1 + $0x10] sm:$0xff]  ;;  %v26_v6 = vld [vmem:[%s327_s1 + $0x28] sm:$0xff]  ;;  %v28_v7 = vld [vmem:[%s327_s1 + $0x38] sm:$0xff] }
   0x3   :  { %v59_v8 = vpack.c.bf16 %v23_v5, %v21_v2  ;;  %v62_v9 = vpack.c.bf16 %v28_v7, %v26_v6  ;;  %v25_v10 = vld [vmem:[%s327_s1 + $0x20] sm:$0xff]  ;;  %v27_v11 = vld [vmem:[%s327_s1 + $0x30] sm:$0xff]  ;;  %v30_v12 = vld [vmem:[%s327_s1 + $0x48] sm:$0xff] }
   0x4   :  { %102 = vmatprep.subr.bf16.mxu0 %v60_v4  ;;  %v32_v13 = vld [vmem:[%s327_s1 + $0x58] sm:$0xff]  ;;  %v61_v14 = vpack.c.bf16 %v27_v11, %v25_v10  ;;  %v29_v16 = vld [vmem:[%s327_s1 + $0x40] sm:$0xff]  ;;  %v31_v17 = vld [vmem:[%s327_s1 + $0x50] sm:$0xff] }
   0x5   :  { %103 = vmatpush1.bf16.msra.mxu0 %v59_v8  ;;  %v64_v15 = vpack.c.bf16 %v32_v13, %v30_v12  ;;  %v34_v18 = vld [vmem:[%s327_s1 + $0x68] sm:$0xff]  ;;  %v36_v19 = vld [vmem:[%s327_s1 + $0x78] sm:$0xff]  ;;  %v63_v20 = vpack.c.bf16 %v31_v17, %v29_v16  ;;  %v33_v22 = vld [vmem:[%s327_s1 + $0x60] sm:$0xff] }
   0x6   :  { %104 = vmatprep.subr.bf16.mxu0 %v62_v9  ;;  %v66_v21 = vpack.c.bf16 %v36_v19, %v34_v18  ;;  %v35_v23 = vld [vmem:[%s327_s1 + $0x70] sm:$0xff]  ;;  %v38_v24 = vld [vmem:[%s327_s1 + $0x88] sm:$0xff]  ;;  %v40_v25 = vld [vmem:[%s327_s1 + $0x98] sm:$0xff] }
   0x7   :  { %v65_v26 = vpack.c.bf16 %v35_v23, %v33_v22  ;;  %v16_v27 = vld [vmem:[%s328_s0 + $0x8] sm:$0xff]  ;;  %v68_v28 = vpack.c.bf16 %v40_v25, %v38_v24  ;;  %v37_v29 = vld [vmem:[%s327_s1 + $0x80] sm:$0xff]  ;;  %v39_v30 = vld [vmem:[%s327_s1 + $0x90] sm:$0xff] }
   0x8   :  { %v18_v31 = vld [vmem:[%s328_s0 + $0x18] sm:$0xff]  ;;  %v42_v32 = vld [vmem:[%s327_s1 + $0xa8] sm:$0xff]  ;;  %v79_v35 = vld [vmem:[%s329_s2] sm:$0xff]  ;;  %v67_v36 = vpack.c.bf16 %v39_v30, %v37_v29 }
   0x9   :  { %105 = vmatpush1.bf16.msra.mxu0 %v61_v14  ;;  %v44_v33 = vld [vmem:[%s327_s1 + $0xb8] sm:$0xff]  ;;  %v20_v34 = vpack.c.bf16 %v18_v31, %v16_v27  ;;  %83 = vperm.xlu0 %161, %v79_v35   ;;  %v80_v37 = vld [vmem:[%s329_s2 + $0x8] sm:$0xff]  ;;  %v41_v39 = vld [vmem:[%s327_s1 + $0xa0] sm:$0xff] }
   0xa   :  { %106 = vmatprep.subr.bf16.mxu0 %v64_v15  ;;  %v70_v38 = vpack.c.bf16 %v44_v33, %v42_v32  ;;  %v43_v40 = vld [vmem:[%s327_s1 + $0xb0] sm:$0xff]  ;;  %v46_v41 = vld [vmem:[%s327_s1 + $0xc8] sm:$0xff]  ;;  %v48_v42 = vld [vmem:[%s327_s1 + $0xd8] sm:$0xff] }
   0xb   :  { %159 = vmatprep.mubr.msk.bf16.mxu0 %vm91_vm0, %v20_v34  ;;  %v69_v43 = vpack.c.bf16 %v43_v40, %v41_v39  ;;  %v72_v44 = vpack.c.bf16 %v48_v42, %v46_v41  ;;  %v45_v45 = vld [vmem:[%s327_s1 + $0xc0] sm:$0xff]  ;;  %v47_v46 = vld [vmem:[%s327_s1 + $0xd0] sm:$0xff]  ;;  %v50_v47 = vld [vmem:[%s327_s1 + $0xe8] sm:$0xff] }
   0xc   :  { %v52_v48 = vld [vmem:[%s327_s1 + $0xf8] sm:$0xff]  ;;  %v71_v49 = vpack.c.bf16 %v47_v46, %v45_v45  ;;  %v49_v51 = vld [vmem:[%s327_s1 + $0xe0] sm:$0xff]  ;;  %v51_v52 = vld [vmem:[%s327_s1 + $0xf0] sm:$0xff] }
   0xd   :  { %107 = vmatpush1.bf16.msra.mxu0 %v63_v20  ;;  %88 = vperm.xlu0 %161, %v80_v37   ;;  %v74_v50 = vpack.c.bf16 %v52_v48, %v50_v47  ;;  %v54_v53 = vld [vmem:[%s327_s1 + $0x108] sm:$0xff]  ;;  %v56_v54 = vld [vmem:[%s327_s1 + $0x118] sm:$0xff]  ;;  %v73_v55 = vpack.c.bf16 %v51_v52, %v49_v51  ;;  %v53_v57 = vld [vmem:[%s327_s1 + $0x100] sm:$0xff] }
   0xe   :  { %108 = vmatprep.subr.bf16.mxu0 %v66_v21  ;;  %v76_v56 = vpack.c.bf16 %v56_v54, %v54_v53  ;;  %v55_v58 = vld [vmem:[%s327_s1 + $0x110] sm:$0xff]  ;;  %v58_v59 = vld [vmem:[%s327_s1 + $0x128] sm:$0x3f]  ;;  %v57_v60 = vld [vmem:[%s327_s1 + $0x120] sm:$0x3f] }
   0xf   :  { %v75_v61 = vpack.c.bf16 %v55_v58, %v53_v57  ;;  %v78_v62 = vpack.c.bf16 %v58_v59, %v58_v59  ;;  %v77_v63 = vpack.c.bf16 %v57_v60, %v57_v60  ;;  %v15_v0 = vld [vmem:[%s328_s0] sm:$0xff]  ;;  %v17_v1 = vld [vmem:[%s328_s0 + $0x10] sm:$0xff] }
  0x10   :  { %v19_v3 = vpack.c.bf16 %v17_v1, %v15_v0 }
  0x11   :  { %109 = vmatpush1.bf16.msra.mxu0 %v65_v26  ;;  %v97_v2 = vsel %vm95_vm1, %v77_v63, 0 }
  0x12   :  { %110 = vmatprep.subr.bf16.mxu0 %v68_v28 }
  0x15   :  { %111 = vmatpush1.bf16.msra.mxu0 %v67_v36 }
  0x16   :  { %112 = vmatprep.subr.bf16.mxu0 %v70_v38 }
  0x19   :  { %113 = vmatpush1.bf16.msra.mxu0 %v69_v43 }
  0x1a   :  { %114 = vmatprep.subr.bf16.mxu0 %v72_v44 }
  0x1d   :  { %115 = vmatpush1.bf16.msra.mxu0 %v71_v49 }
  0x1e   :  { %116 = vmatprep.subr.bf16.mxu0 %v74_v50 }
  0x21   :  { %117 = vmatpush1.bf16.msra.mxu0 %v73_v55 }
  0x22   :  { %118 = vmatprep.subr.bf16.mxu0 %v76_v56 }
  0x25   :  { %119 = vmatpush1.bf16.msra.mxu0 %v75_v61 }
  0x26   :  { %158 = vmatprep.subr.msk.bf16.mxu0 %vm95_vm1, %v78_v62 }
  0x29   :  { %121 = vmatpush1.bf16.msra.mxu0 %v97_v2 }
  0x2c   :  { %135 = vmatmul.mubr.bf16.vlgmr.msra.gmra.mrb[0].mxu0 %v19_v3 }
  0x88   :  { %v84_v4 = vpop.permute.xlu0 %83 }
  0x8c   :  { %v89_v8 = vpop.permute.xlu0 %88 }
  0xff   :  { %v136_v5 = vpop.f32.mrb[0].mxu0 }
 0x100   :  { %v137_v6 = vadd.f32 %v136_v5, %v84_v4  ;;  %v138_v7 = vpop.f32.mrb[1].mxu0 }
 0x101   :  { %v139_v9 = vadd.f32 %v138_v7, %v84_v4  ;;  %v140_v10 = vpop.f32.mrb[2].mxu0 }
 0x102   :  { %v145_v11 = vmax.f32 %v137_v6, 0.0  ;;  %v141_v12 = vadd.f32 %v140_v10, %v89_v8  ;;  %v142_v13 = vpop.f32.mrb[3].mxu0 }
 0x103   :  { %v146_v14 = vmax.f32 %v139_v9, 0.0  ;;  %v143_v15 = vadd.f32 %v142_v13, %v89_v8 }
 0x104   :  { %149 = vst [vmem:[%s330_s3] sm:$0xff] %v145_v11  ;;  %v147_v16 = vmax.f32 %v141_v12, 0.0 }
 0x105   :  { %151 = vst.msk [vmem:[%s330_s3 + $0x8] sm:$0xff] %vm150_vm2, %v146_v14  ;;  %v148_v17 = vmax.f32 %v143_v15, 0.0 }
 0x106   :  { %152 = vst [vmem:[%s330_s3 + $0x10] sm:$0xff] %v147_v16 }
 0x107   :  { %153 = vst.msk [vmem:[%s330_s3 + $0x18] sm:$0xff] %vm150_vm2, %v148_v17 }

// kernel: net_forward.5
= control target key start
LH: loop header
LB: loop body
LE: loop exit
PB: predicated region body
PF: predicated region fallthrough
CT: control target
= control target key end

     0   :  { %v518_v3 = vmov 0   ;;  %v519_v26 = vmov 1983009808   ;;  %v34_v28 = vlaneseq  ;;  %s843_s0 = inlined_call_operand.vmem [shape: f32[2,400], index: 0, kind: input, shape index: {}]   ;;  %s844_s1 = inlined_call_operand.vmem [shape: f32[400,120], index: 1, kind: input, shape index: {}]   ;;  %s845_s2 = inlined_call_operand.vmem [shape: f32[1,120], index: 2, kind: input, shape index: {}]   ;;  %s846_s3 = inlined_call_operand.vmem [shape: f32[120,84], index: 3, kind: input, shape index: {}]   ;;  %s847_s4 = inlined_call_operand.vmem [shape: f32[1,84], index: 4, kind: input, shape index: {}]   ;;  %s848_s5 = inlined_call_operand.vmem [shape: f32[84,10], index: 5, kind: input, shape index: {}]   ;;  %s849_s6 = inlined_call_operand.vmem [shape: f32[1,10], index: 6, kind: input, shape index: {}]   ;;  %s850_s7 = inlined_call_operand.hbm [shape: f32[2,10], index: 7, kind: output, shape index: {}]  }
   0x1   :  { %v71_v0 = vld [vmem:[%s844_s1 + $0x80] sm:$0xff]  ;;  %v72_v1 = vld [vmem:[%s844_s1 + $0x88] sm:$0xff]  ;;  %181 = vmatprep.subr.bf16.mxu1 %v518_v3  ;;  %v73_v10 = vld [vmem:[%s844_s1 + $0x90] sm:$0xff]  ;;  %v32_v27 = vunpack.c.l.s4 %v519_v26 }
   0x2   :  { %v87_v2 = vld [vmem:[%s844_s1 + $0x100] sm:$0xff]  ;;  %v113_v4 = vpack.c.bf16 %v72_v1, %v71_v0  ;;  %v88_v5 = vld [vmem:[%s844_s1 + $0x108] sm:$0xff]  ;;  %v74_v11 = vld [vmem:[%s844_s1 + $0x98] sm:$0xff]  ;;  %v35_v39 = vshrl.u32 %v34_v28, 7 }
   0x3   :  { %v55_v6 = vld [vmem:[%s844_s1] sm:$0xff]  ;;  %v56_v7 = vld [vmem:[%s844_s1 + $0x8] sm:$0xff]  ;;  %v121_v8 = vpack.c.bf16 %v88_v5, %v87_v2  ;;  %v89_v12 = vld [vmem:[%s844_s1 + $0x110] sm:$0xff]  ;;  %v114_v13 = vpack.c.bf16 %v74_v11, %v73_v10  ;;  %v33_v38 = vunpack.c.0.s8 %v32_v27 }
   0x4   :  { %v105_v9 = vpack.c.bf16 %v56_v7, %v55_v6  ;;  %410 = vmatprep.subr.bf16.mxu0 %v113_v4  ;;  %v90_v14 = vld [vmem:[%s844_s1 + $0x118] sm:$0xff]  ;;  %v57_v15 = vld [vmem:[%s844_s1 + $0x10] sm:$0xff]  ;;  %v75_v19 = vld [vmem:[%s844_s1 + $0xa0] sm:$0xff] }
   0x5   :  { %v58_v16 = vld [vmem:[%s844_s1 + $0x18] sm:$0xff]  ;;  %182 = vmatpush1.bf16.msra.mxu1 %v121_v8  ;;  %v122_v17 = vpack.c.bf16 %v90_v14, %v89_v12  ;;  %v76_v20 = vld [vmem:[%s844_s1 + $0xa8] sm:$0xff]  ;;  %v91_v21 = vld [vmem:[%s844_s1 + $0x120] sm:$0xff]  ;;  %v36_v49 = vsub.s32 %v33_v38, %v35_v39 }
   0x6   :  { %411 = vmatpush3.bf16.msra.mxu0 %v105_v9  ;;  %v106_v18 = vpack.c.bf16 %v58_v16, %v57_v15  ;;  %183 = vmatprep.subr.bf16.mxu1 %v518_v3  ;;  %v115_v22 = vpack.c.bf16 %v76_v20, %v75_v19  ;;  %v92_v23 = vld [vmem:[%s844_s1 + $0x128] sm:$0xff]  ;;  %v59_v24 = vld [vmem:[%s844_s1 + $0x20] sm:$0xff]  ;;  %v77_v29 = vld [vmem:[%s844_s1 + $0xb0] sm:$0xff] }
   0x7   :  { %412 = vmatprep.subr.bf16.mxu0 %v114_v13  ;;  %v60_v25 = vld [vmem:[%s844_s1 + $0x28] sm:$0xff]  ;;  %v78_v30 = vld [vmem:[%s844_s1 + $0xb8] sm:$0xff]  ;;  %v123_v31 = vpack.c.bf16 %v92_v23, %v91_v21  ;;  %v93_v33 = vld [vmem:[%s844_s1 + $0x130] sm:$0xff] }
   0x8   :  { %v107_v32 = vpack.c.bf16 %v60_v25, %v59_v24  ;;  %v116_v34 = vpack.c.bf16 %v78_v30, %v77_v29  ;;  %v94_v35 = vld [vmem:[%s844_s1 + $0x138] sm:$0xff]  ;;  %v61_v36 = vld [vmem:[%s844_s1 + $0x30] sm:$0xff]  ;;  %v79_v40 = vld [vmem:[%s844_s1 + $0xc0] sm:$0xff] }
   0x9   :  { %184 = vmatpush1.bf16.msra.mxu1 %v122_v17  ;;  %v62_v37 = vld [vmem:[%s844_s1 + $0x38] sm:$0xff]  ;;  %v80_v41 = vld [vmem:[%s844_s1 + $0xc8] sm:$0xff]  ;;  %v124_v42 = vpack.c.bf16 %v94_v35, %v93_v33  ;;  %v95_v44 = vld [vmem:[%s844_s1 + $0x140] sm:$0xff] }
   0xa   :  { %413 = vmatpush3.bf16.msra.mxu0 %v106_v18  ;;  %185 = vmatprep.subr.bf16.mxu1 %v518_v3  ;;  %v108_v43 = vpack.c.bf16 %v62_v37, %v61_v36  ;;  %v117_v45 = vpack.c.bf16 %v80_v41, %v79_v40  ;;  %v96_v46 = vld [vmem:[%s844_s1 + $0x148] sm:$0xff]  ;;  %v63_v47 = vld [vmem:[%s844_s1 + $0x40] sm:$0xff]  ;;  %v81_v50 = vld [vmem:[%s844_s1 + $0xd0] sm:$0xff] }
   0xb   :  { %414 = vmatprep.subr.bf16.mxu0 %v115_v22  ;;  %v64_v48 = vld [vmem:[%s844_s1 + $0x48] sm:$0xff]  ;;  %v82_v51 = vld [vmem:[%s844_s1 + $0xd8] sm:$0xff]  ;;  %v125_v52 = vpack.c.bf16 %v96_v46, %v95_v44  ;;  %v97_v54 = vld [vmem:[%s844_s1 + $0x150] sm:$0xff] }
   0xc   :  { %v109_v53 = vpack.c.bf16 %v64_v48, %v63_v47  ;;  %v28_v55 = vld [vmem:[%s843_s0] sm:$0xff]  ;;  %v118_v56 = vpack.c.bf16 %v82_v51, %v81_v50  ;;  %v98_v57 = vld [vmem:[%s844_s1 + $0x158] sm:$0xff]  ;;  %v65_v58 = vld [vmem:[%s844_s1 + $0x50] sm:$0xff] }
   0xd   :  { %186 = vmatpush1.bf16.msra.mxu1 %v123_v31  ;;  %v66_v59 = vld [vmem:[%s844_s1 + $0x58] sm:$0xff]  ;;  %v30_v60 = vcombine.high %v28_v55, %v28_v55  ;;  %v37_v61 = vrot.slane %v28_v55, %v36_v49  ;;  %v83_v62 = vld [vmem:[%s844_s1 + $0xe0] sm:$0xff]  ;;  %v84_v63 = vld [vmem:[%s844_s1 + $0xe8] sm:$0xff]  ;;  %v126_v2 = vpack.c.bf16 %v98_v57, %v97_v54 }
   0xe   :  { %415 = vmatpush3.bf16.msra.mxu0 %v107_v32  ;;  %187 = vmatprep.subr.bf16.mxu1 %v518_v3  ;;  %v110_v4 = vpack.c.bf16 %v66_v59, %v65_v58  ;;  %v99_v5 = vld [vmem:[%s844_s1 + $0x160] sm:$0xff] }
   0xf   :  { %416 = vmatprep.subr.bf16.mxu0 %v116_v34  ;;  %v45_v0 = vcombine.high %v37_v61, %v37_v61  ;;  %v44_v1 = vrot.slane %v30_v60, %v36_v49 }
  0x11   :  { %188 = vmatpush1.bf16.msra.mxu1 %v124_v42 }
  0x12   :  { %417 = vmatpush3.bf16.msra.mxu0 %v108_v43  ;;  %189 = vmatprep.subr.bf16.mxu1 %v518_v3 }
  0x13   :  { %418 = vmatprep.subr.bf16.mxu0 %v117_v45 }
  0x15   :  { %190 = vmatpush1.bf16.msra.mxu1 %v125_v52 }
  0x16   :  { %419 = vmatpush3.bf16.msra.mxu0 %v109_v53 }
  0x17   :  { %12 = vsyncpa [#allocation3], 0  ;;  %191 = vmatprep.subr.bf16.mxu1 %v518_v3  ;;  %420 = vmatprep.subr.bf16.mxu0 %v118_v56  ;;  %v119_v6 = vpack.c.bf16 %v84_v63, %v83_v62  ;;  %v100_v7 = vld [vmem:[%s844_s1 + $0x168] sm:$0xff]  ;;  %v67_v8 = vld [vmem:[%s844_s1 + $0x60] sm:$0xff]  ;;  %v52_v10 = vpack.c.bf16 %v45_v0, %v45_v0  ;;  %v46_v11 = vcombine.high %v44_v1, %v44_v1  ;;  %vm137_vm0 = vcmask 130048  }
  0x18   :  { %v68_v9 = vld [vmem:[%s844_s1 + $0x68] sm:$0xff]  ;;  %v85_v12 = vld [vmem:[%s844_s1 + $0xf0] sm:$0xff]  ;;  %v86_v13 = vld [vmem:[%s844_s1 + $0xf8] sm:$0xff]  ;;  %v127_v15 = vpack.c.bf16 %v100_v7, %v99_v5  ;;  %v51_v28 = vpack.c.bf16 %v37_v61, %v37_v61  ;;  %v520_v31 = vmov 0.0   ;;  %v53_v34 = vpack.c.bf16 %v44_v1, %v44_v1 }
  0x19   :  { %173 = vmatprep.mubr.bf16.mxu0 %v52_v10  ;;  %v54_v14 = vpack.c.bf16 %v46_v11, %v46_v11  ;;  %192 = vmatpush1.bf16.msra.mxu1 %v126_v2  ;;  %v111_v16 = vpack.c.bf16 %v68_v9, %v67_v8  ;;  %v101_v17 = vld [vmem:[%s844_s1 + $0x170] sm:$0xff]  ;;  %v120_v18 = vpack.c.bf16 %v86_v13, %v85_v12  ;;  %v102_v19 = vld [vmem:[%s844_s1 + $0x178] sm:$0xff]  ;;  %v103_v24 = vld [vmem:[%s844_s1 + $0x180] sm:$0xff]  ;;  %vm257_vm1 = vcmask 1043456  }
  0x1a   :  { %421 = vmatpush3.bf16.msra.mxu0 %v110_v4  ;;  %193 = vmatprep.subr.bf16.mxu1 %v518_v3  ;;  %v69_v20 = vld [vmem:[%s844_s1 + $0x70] sm:$0xff]  ;;  %v70_v21 = vld [vmem:[%s844_s1 + $0x78] sm:$0xff]  ;;  %v128_v22 = vpack.c.bf16 %v102_v19, %v101_v17  ;;  %v104_v25 = vld [vmem:[%s844_s1 + $0x188] sm:$0xff]  ;;  %vm521_vm2 = vmmov 0   ;;  %vm253_vm3 = vcmask 982016   ;;  %vm331_vm4 = vcmask 1041408  }
  0x1b   :  { %422 = vmatprep.subr.bf16.mxu0 %v119_v6  ;;  %405 = vmatprep.mubr.msk.bf16.mxu1 %vm137_vm0, %v54_v14  ;;  %v112_v23 = vpack.c.bf16 %v70_v21, %v69_v20  ;;  %v223_v26 = vld [vmem:[%s846_s3] sm:$0xff]  ;;  %v224_v27 = vld [vmem:[%s846_s3 + $0x8] sm:$0xff]  ;;  %v129_v29 = vpack.c.bf16 %v104_v25, %v103_v24  ;;  %v225_v32 = vld [vmem:[%s846_s3 + $0x10] sm:$0xff]  ;;  %vm327_vm5 = vcmask 687104   ;;  %vm375_vm6 = vcmask 74752  }
  0x1c   :  { %v238_v30 = vpack.c.bf16 %v224_v27, %v223_v26  ;;  %v226_v33 = vld [vmem:[%s846_s3 + $0x18] sm:$0xff]  ;;  %v228_v36 = vld [vmem:[%s846_s3 + $0x28] sm:$0xff]  ;;  %v229_v38 = vld [vmem:[%s846_s3 + $0x30] sm:$0xff] }
  0x1d   :  { %194 = vmatpush1.bf16.msra.mxu1 %v127_v15  ;;  %v239_v35 = vpack.c.bf16 %v226_v33, %v225_v32  ;;  %v230_v39 = vld [vmem:[%s846_s3 + $0x38] sm:$0xff]  ;;  %v231_v41 = vld [vmem:[%s846_s3 + $0x40] sm:$0xff]  ;;  %v232_v42 = vld [vmem:[%s846_s3 + $0x48] sm:$0xff] }
  0x1e   :  { %423 = vmatpush3.bf16.msra.mxu0 %v111_v16  ;;  %195 = vmatprep.subr.bf16.mxu1 %v518_v3  ;;  %v241_v40 = vpack.c.bf16 %v230_v39, %v229_v38  ;;  %v242_v43 = vpack.c.bf16 %v232_v42, %v231_v41  ;;  %v233_v44 = vld [vmem:[%s846_s3 + $0x50] sm:$0xff]  ;;  %v234_v45 = vld [vmem:[%s846_s3 + $0x58] sm:$0xff]  ;;  %v235_v47 = vld [vmem:[%s846_s3 + $0x60] sm:$0xff] }
  0x1f   :  { %424 = vmatprep.subr.bf16.mxu0 %v120_v18  ;;  %v243_v46 = vpack.c.bf16 %v234_v45, %v233_v44  ;;  %v236_v48 = vld [vmem:[%s846_s3 + $0x68] sm:$0xff]  ;;  %v237_v50 = vld [vmem:[%s846_s3 + $0x70] sm:$0xff]  ;;  %v303_v53 = vld [vmem:[%s848_s5] sm:$0xff] }
  0x20   :  { %v244_v49 = vpack.c.bf16 %v236_v48, %v235_v47  ;;  %v245_v51 = vpack.c.bf16 %v237_v50, %v237_v50  ;;  %v304_v54 = vld [vmem:[%s848_s5 + $0x8] sm:$0xff]  ;;  %v305_v55 = vld [vmem:[%s848_s5 + $0x10] sm:$0xff]  ;;  %v306_v57 = vld [vmem:[%s848_s5 + $0x18] sm:$0xff] }
  0x21   :  { %196 = vmatpush1.bf16.msra.mxu1 %v128_v22  ;;  %v314_v56 = vpack.c.bf16 %v304_v54, %v303_v53  ;;  %v315_v58 = vpack.c.bf16 %v306_v57, %v305_v55  ;;  %v307_v59 = vld [vmem:[%s848_s5 + $0x20] sm:$0xff]  ;;  %v308_v60 = vld [vmem:[%s848_s5 + $0x28] sm:$0xff]  ;;  %v309_v62 = vld [vmem:[%s848_s5 + $0x30] sm:$0xff] }
  0x22   :  { %425 = vmatpush3.bf16.msra.mxu0 %v112_v23  ;;  %197 = vmatprep.subr.bf16.mxu1 %v518_v3  ;;  %v227_v3 = vld [vmem:[%s846_s3 + $0x20] sm:$0xff]  ;;  %v259_v52 = vsel %vm257_vm1, %v245_v51, 0  ;;  %v316_v61 = vpack.c.bf16 %v308_v60, %v307_v59  ;;  %v310_v63 = vld [vmem:[%s848_s5 + $0x38] sm:$0xff]  ;;  %v312_v17 = vld [vmem:[%s848_s5 + $0x48] sm:$0xff] }
  0x23   :  { %448 = vmatprep.subr.bf16.mxu0 %v520_v31  ;;  %v240_v37 = vpack.c.bf16 %v228_v36, %v227_v3  ;;  %v317_v0 = vpack.c.bf16 %v310_v63, %v309_v62  ;;  %v404_v4 = vld [vmem:[%s845_s2] ss:$0 sm:$0xff]  ;;  %v313_v19 = vld [vmem:[%s848_s5 + $0x50] sm:$0xf] }
  0x24   :  { %v311_v16 = vld [vmem:[%s848_s5 + $0x40] sm:$0xff]  ;;  %v319_v20 = vpack.c.bf16 %v313_v19, %v313_v19 }
  0x25   :  { %174 = vmatmul.mubr.bf16.vlgmr.msra.gmra.mrb[0].mxu0 %v51_v28  ;;  %198 = vmatpush1.bf16.msra.mxu1 %v129_v29  ;;  %v318_v18 = vpack.c.bf16 %v312_v17, %v311_v16  ;;  %v406_v22 = vld [vmem:[%s847_s4] ss:$0 sm:$0xff]  ;;  %s522_s4 = smov [#allocation2]  }
  0x26   :  { %449 = vmatpush3.bf16.msra.mxu0 %v238_v30  ;;  %468 = vmatprep.subr.bf16.mxu1 %v520_v31  ;;  %v333_v21 = vsel %vm331_vm4, %v319_v20, 0  ;;  %v408_v30 = vld [vmem:[%s849_s6] ss:$0 sm:$0xff]  ;;  %s396_s6 = sshll.u32 %s522_s4, 4  ;;  %s397_s6 = int_to_ptr.vmem [resolvable:$true] %s396_s6 }
  0x27   :  { %450 = vmatprep.subr.bf16.mxu0 %v520_v31  ;;  %464 = vmatprep.mubr.msk.bf16.mxu0 %vm521_vm2, %v520_v31  ;;  %s494_s1 = scalar_lea.vmem %s397_s6, 32  ;;  %p499_p1 = scmp.lt.s32.totalorder %s397_s6, %s397_s6 }
  0x28   :  { %214 = vmatmul.mubr.bf16.vlgmr.msra.gmra.mrb[0].mxu1 %v53_v34  ;;  %p495_p0 = scmp.ne.s32.totalorder %s397_s6, %s494_s1  ;;  %p500_p2 = scmp.lt.s32.totalorder %s494_s1, %s494_s1 }
  0x29   :  { %480 = vmatprep.mubr.msk.bf16.mxu1 %vm521_vm2, %v520_v31  ;;  %469 = vmatpush3.bf16.msra.mxu1 %v314_v56 }
  0x2a   :  { %451 = vmatpush3.bf16.msra.mxu0 %v239_v35  ;;  %470 = vmatprep.subr.bf16.mxu1 %v520_v31  ;;  %p501_p3 = por %p500_p2, %p499_p1 }
  0x2b   :  { %452 = vmatprep.subr.bf16.mxu0 %v520_v31 }
  0x2c   :  { %p502_p4 = pnand %p501_p3, %p495_p0 }
  0x2d   :  { %471 = vmatpush3.bf16.msra.mxu1 %v315_v58 }
  0x2e   :  { %453 = vmatpush3.bf16.msra.mxu0 %v240_v37  ;;  %472 = vmatprep.subr.bf16.mxu1 %v520_v31 }
  0x2f   :  { %454 = vmatprep.subr.bf16.mxu0 %v520_v31 }
  0x31   :  { %473 = vmatpush3.bf16.msra.mxu1 %v316_v61 }
  0x32   :  { %455 = vmatpush3.bf16.msra.mxu0 %v241_v40  ;;  %474 = vmatprep.subr.bf16.mxu1 %v520_v31 }
  0x33   :  { %456 = vmatprep.subr.bf16.mxu0 %v520_v31 }
  0x35   :  { %475 = vmatpush3.bf16.msra.mxu1 %v317_v0 }
  0x36   :  { %457 = vmatpush3.bf16.msra.mxu0 %v242_v43  ;;  %476 = vmatprep.subr.bf16.mxu1 %v520_v31 }
  0x37   :  { %458 = vmatprep.subr.bf16.mxu0 %v520_v31 }
  0x39   :  { %477 = vmatpush3.bf16.msra.mxu1 %v318_v18 }
  0x3a   :  { %459 = vmatpush3.bf16.msra.mxu0 %v243_v46  ;;  %478 = vmatprep.subr.bf16.mxu1 %v520_v31 }
  0x3b   :  { %460 = vmatprep.subr.bf16.mxu0 %v520_v31 }
  0x3d   :  { %479 = vmatpush3.bf16.msra.mxu1 %v333_v21 }
  0x3e   :  { %461 = vmatpush3.bf16.msra.mxu0 %v244_v49 }
  0x3f   :  { %462 = vmatprep.subr.bf16.mxu0 %v520_v31 }
  0x42   :  { %463 = vmatpush3.bf16.msra.mxu0 %v259_v52 }
  0xf8   :  { %v426_v1 = vpop.f32.mrb[0].mxu0 }
  0xf9   :  { %v427_v2 = vpop.f32.mrb[1].mxu0 }
  0xfa   :  { %v428_v5 = vadd.f32 %v427_v2, %v426_v1  ;;  %v429_v6 = vpop.f32.mrb[2].mxu0 }
  0xfb   :  { %v430_v7 = vpop.f32.mrb[3].mxu0  ;;  %v215_v9 = vpop.f32.mrb[0].mxu1 }
  0xfc   :  { %v176_v8 = vadd.f32 %v428_v5, %v404_v4  ;;  %v217_v10 = vpop.f32.mrb[1].mxu1 }
  0xfd   :  { %v218_v12 = vpop.f32.mrb[2].mxu1 }
  0xfe   :  { %v216_v11 = vadd.f32 %v215_v9, %v176_v8  ;;  %v219_v13 = vpop.f32.mrb[3].mxu1 }
 0x100   :  { %v221_v14 = vmax.f32 %v216_v11, 0.0 }
 0x102   :  { %v222_v15 = vpack.c.bf16 %v221_v14, %v221_v14 }
 0x104   :  { %465 = vmatmul.mubr.msk.bf16.vlgmr.msra.gmra.mrb[4].mxu0 %vm253_vm3, %v222_v15 }
 0x1d7   :  { %v295_v23 = vpop.f32.mrb[4].mxu0 }
 0x1d8   :  { %v296_v24 = vadd.f32 %v406_v22, %v295_v23  ;;  %v466_v25 = vpop.f32.mrb[5].mxu0 }
 0x1d9   :  { %v298_v26 = vpop.f32.mrb[6].mxu0 }
 0x1da   :  { %v301_v27 = vmax.f32 %v296_v24, 0.0  ;;  %v467_v28 = vpop.f32.mrb[7].mxu0 }
 0x1dc   :  { %v302_v29 = vpack.c.bf16 %v301_v27, %v301_v27 }
 0x1de   :  { %481 = vmatmul.mubr.msk.bf16.vlgmr.msra.gmra.mrb[4].mxu1 %vm327_vm5, %v302_v29 }
 0x2b1   :  { %v369_v31 = vpop.f32.mrb[4].mxu1 }
 0x2b2   :  { %v370_v32 = vadd.f32 %v408_v30, %v369_v31  ;;  %v482_v33 = vpop.f32.mrb[5].mxu1 }
 0x2b3   :  { %v372_v34 = vpop.f32.mrb[6].mxu1 }
 0x2b4   :  { %v483_v35 = vpop.f32.mrb[7].mxu1  ;;  %v376_v3 = vsel %vm375_vm6, %v370_v32, -inf }
 0x2b5   :  { %377 = vmax.xlane.f32.xlu0 %v376_v3 }
 0x342   :  { %v378_v36 = vpop.xlane.xlu0 %377 }
 0x343   :  { %v379_v37 = vsub.f32 %v370_v32, %v378_v36 }
 0x345   :  { %v380_v38 = vmul.f32 1.442695, %v379_v37 }
 0x347   :  { %490 = vpow2.f32 %v380_v38 }
 0x351   :  { %v491_v39 = vpop.eup %490 }
 0x352   :  { %v382_v40 = vsel %vm375_vm6, %v491_v39, 0.0 }
 0x353   :  { %383 = vadd.xlane.f32.xlu0 %v382_v40 }
 0x3e0   :  { %v384_v41 = vpop.xlane.xlu0 %383 }
 0x3e1   :  { %492 = vlog2.f32 %v384_v41 }
 0x3eb   :  { %v493_v42 = vpop.eup %492 }
 0x3ec   :  { %v386_v43 = vmul.f32 0.6931472, %v493_v42 }
 0x3ee   :  { %v387_v44 = vadd.f32 %v386_v43, %v378_v36 }
 0x3f0   :  { %v388_v45 = vsub.f32 %v370_v32, %v387_v44 }
 0x3f2   :  { %389 = vst.msk [vmem:[#allocation2] sm:$0x3] %vm375_vm6, %v388_v45 }
 0x3f3   :  { %505 = shalt.err (!%p502_p4)
}
 0x3f4   :  { %s506_s16 = scalar_lea.hbm %s850_s7, 32 }
 0x3f5   :  { %p507_p5 = scmp.ne.s32.totalorder %s850_s7, %s506_s16  ;;  %p510_p6 = scmp.lt.u32.totalorder %s506_s16, %s850_s7 }
 0x3f7   :  { %p512_p7 = pnand %p510_p6, %p507_p5 }
 0x3f9   :  { %515 = shalt.err (!%p512_p7)
}
 0x3fa   :  { %399 = dma.vmem_to_hbm [thread:$0]  %s397_s6, 32, %s850_s7, [#allocation3]  }
 0x3fb   :  { %516 = dma.done.wait [#allocation3], 32  }
 0x3fc   :  { %517 = vsyncadd [#allocation3], 4294967264 }
 0x3fd   :  { %403 = vsyncpa [#allocation3], 1 }

</bundles_post_ra>
